<compile_context>
chip_gen: v7x
topology: tpu7x:2x2x1
jax: 0.10.0
libtpu: 0.0.40
codegen_flags: <defaults>
</compile_context>

<pallas_src>
import functools

import jax
import jax.numpy as jnp
from jax.experimental import pallas as pl
from jax.experimental.pallas import tpu as pltpu

BN_EPS = 1e-5
LANE = 128


def _round_up(x, m):
    return ((x + m - 1) // m) * m


def _cdiv(a, b):
    return -(-a // b)


def _usable_vmem_bytes():
    """Generation-aware usable VMEM budget: ~3/4 of per-core capacity.
    v5e/v6e (128 MiB) -> ~96 MiB, v7x (64 MiB) -> ~48 MiB.  Falls back to the
    conservative v7x number if the query is unavailable."""
    cap = None
    try:
        cap = getattr(pltpu.get_tpu_info(), "vmem_capacity_bytes", None)
    except Exception:
        cap = None
    if not cap:
        cap = 64 * 1024 * 1024
    return int(cap) * 3 // 4


# ------------------------------------------------------------------ kernels --

def _bn_fc_single_kernel(x_ref, gamma_ref, beta_ref, w_ref, b_ref, o_ref):
    """Whole-batch single-block kernel: BN (batch stats, centered form) + Linear."""
    x = x_ref[...].astype(jnp.float32)                           # (N, D)
    mean = jnp.mean(x, axis=0, keepdims=True)                    # (1, D)
    centered = x - mean
    var = jnp.mean(centered * centered, axis=0, keepdims=True)   # biased
    scale = gamma_ref[...] * jax.lax.rsqrt(var + BN_EPS)         # gamma folded in
    y = centered * scale + beta_ref[...]                         # f32 BN math
    out = jnp.dot(y.astype(jnp.bfloat16), w_ref[...],            # bf16 MXU, f32 acc
                  preferred_element_type=jnp.float32)
    o_ref[...] = (out + b_ref[...]).astype(o_ref.dtype)


def _bn_stats_kernel(x_ref, stats_ref, *, tile_n, n_rows, tiles_per_split):
    """Pass 1: per-feature sum / sum-of-squares, ragged last tile masked in-kernel.
    Grid = (num_splits [parallel], tiles_per_split [arbitrary]); each split
    accumulates into its own resident (1, 2, D) slab."""
    j = pl.program_id(1)

    @pl.when(j == 0)
    def _():
        stats_ref[...] = jnp.zeros_like(stats_ref)

    tile_idx = pl.program_id(0) * tiles_per_split + j
    row0 = tile_idx * tile_n
    x = x_ref[...].astype(jnp.float32)                           # (tile_n, D)
    rows = row0 + jax.lax.broadcasted_iota(jnp.int32, x.shape, 0)
    x = jnp.where(rows < n_rows, x, 0.0)                         # mask padded rows
    stats_ref[0, 0:1, :] += jnp.sum(x, axis=0, keepdims=True)    # sum
    stats_ref[0, 1:2, :] += jnp.sum(x * x, axis=0, keepdims=True)  # sum of squares


def _fc_tiled_kernel(x_ref, w_ref, b_ref, o_ref):
    """Pass 2: BN already folded into (W_eff, b_eff) -> pure DMA + MXU kernel."""
    out = jnp.dot(x_ref[...].astype(jnp.bfloat16), w_ref[...],
                  preferred_element_type=jnp.float32)
    o_ref[...] = (out + b_ref[...]).astype(o_ref.dtype)


# ----------------------------------------------------------------- wrappers --

def init_params(key, cnn_dim, n_classes):
    """Deterministic parameter init matching LinClassifier.__init__ (PyTorch layout)."""
    gamma = jnp.ones((cnn_dim,), jnp.float32)                    # BN weight = 1
    beta = jnp.zeros((cnn_dim,), jnp.float32)                    # BN bias = 0
    w_key, _ = jax.random.split(key)
    fc_weight = 0.01 * jax.random.normal(w_key, (n_classes, cnn_dim), jnp.float32)
    fc_bias = jnp.zeros((n_classes,), jnp.float32)
    return gamma, beta, fc_weight, fc_bias


def prepare_params(gamma, beta, fc_weight, fc_bias):
    """One-time layout prep (NOT in the per-call path)."""
    c, d = fc_weight.shape
    c_pad = max(LANE, _round_up(c, LANE))
    w_f32 = jnp.zeros((d, c_pad), jnp.float32).at[:, :c].set(
        fc_weight.T.astype(jnp.float32))
    b_pad = jnp.zeros((1, c_pad), jnp.float32).at[0, :c].set(
        fc_bias.astype(jnp.float32))
    return {
        "gamma": gamma.reshape(1, d).astype(jnp.float32),
        "beta": beta.reshape(1, d).astype(jnp.float32),
        "w_f32": w_f32,                          # for the per-call BN fold
        "w_bf16": w_f32.astype(jnp.bfloat16),    # for the single-block path
        "bias": b_pad,
        "n_classes": int(c),
    }


def lin_classifier_forward(x, params, *, tile_n=512, out_dtype=jnp.float32,
                           force_tiled=False):
    """Forward of LinClassifier. x: (N, cnn_dim); params from prepare_params()."""
    n, d = x.shape
    c_pad = params["w_bf16"].shape[1]
    n_classes = params["n_classes"]
    out_itemsize = jnp.dtype(out_dtype).itemsize
    usable = _usable_vmem_bytes()
    vmem_full = pl.BlockSpec(memory_space=pltpu.MemorySpace.VMEM)

    # ---- single-block path: whole problem VMEM-resident, no grid/pipeline ----
    single_bytes = (3 * n * d * 4                      # x + ~2 f32 temporaries
                    + n * c_pad * out_itemsize         # padded output
                    + d * c_pad * 2                    # bf16 weights
                    + 8 * d * 4 + 2 * c_pad * 4)       # small vectors
    if (not force_tiled) and single_bytes <= usable // 2:
        out = pl.pallas_call(
            _bn_fc_single_kernel,
            out_shape=jax.ShapeDtypeStruct((n, c_pad), out_dtype),
            in_specs=[vmem_full] * 5,
            out_specs=vmem_full,
            compiler_params=pltpu.CompilerParams(vmem_limit_bytes=usable),
        )(x, params["gamma"], params["beta"], params["w_bf16"], params["bias"])
        return out[:, :n_classes]

    # ---- tiled path: pass-1 batch stats, fold BN into (W, b), pass-2 matmul ----
    tile_n = max(8, _round_up(int(tile_n), 8))
    while tile_n > 128:     # keep double-buffered tiles within the VMEM budget
        need = (2 * tile_n * d * 4 + 2 * tile_n * c_pad * 4
                + d * c_pad * 2 + c_pad * 4)
        if need <= usable // 2:
            break
        tile_n //= 2
    n_tiles = _cdiv(n, tile_n)
    num_splits = min(2, n_tiles)             # v7x: 2 TCs split the stats reduction
    tiles_per_split = _cdiv(n_tiles, num_splits)

    def x_stats_map(i, j):
        # Clamp so padding tiles of the rectangular (split, tile) grid stay
        # in-bounds; their rows are masked to zero inside the kernel.
        return (jnp.minimum(i * tiles_per_split + j, n_tiles - 1), 0)

    stats = pl.pallas_call(
        functools.partial(_bn_stats_kernel, tile_n=tile_n, n_rows=n,
                          tiles_per_split=tiles_per_split),
        out_shape=jax.ShapeDtypeStruct((num_splits, 2, d), jnp.float32),
        grid=(num_splits, tiles_per_split),
        in_specs=[pl.BlockSpec((tile_n, d), x_stats_map)],
        out_specs=pl.BlockSpec((1, 2, d), lambda i, j: (i, 0, 0)),
        compiler_params=pltpu.CompilerParams(
            dimension_semantics=("parallel", "arbitrary"),
            vmem_limit_bytes=usable),
    )(x)
    stats = jnp.sum(stats, axis=0)                         # (2, d): combine TCs

    inv_n = 1.0 / n                                        # true batch size
    mean = stats[0:1, :] * inv_n                           # (1, d)
    var = jnp.maximum(stats[1:2, :] * inv_n - mean * mean, 0.0)   # biased var
    scale = params["gamma"] * jax.lax.rsqrt(var + BN_EPS)  # gamma folded in
    # Fold BN into the linear layer (tiny one-off (d, c_pad) ops):
    w_eff = (scale.reshape(d, 1) * params["w_f32"]).astype(jnp.bfloat16)
    b_eff = params["bias"] + jnp.matmul(params["beta"] - mean * scale,
                                        params["w_f32"])

    out = pl.pallas_call(
        _fc_tiled_kernel,
        out_shape=jax.ShapeDtypeStruct((n, c_pad), out_dtype),
        grid=(n_tiles,),
        in_specs=[
            pl.BlockSpec((tile_n, d), lambda i: (i, 0)),
            pl.BlockSpec((d, c_pad), lambda i: (0, 0)),
            pl.BlockSpec((1, c_pad), lambda i: (0, 0)),
        ],
        out_specs=pl.BlockSpec((tile_n, c_pad), lambda i: (i, 0)),
        compiler_params=pltpu.CompilerParams(
            # Independent batch tiles: on v7x the 2 TensorCores split this axis.
            dimension_semantics=("parallel",),
            vmem_limit_bytes=usable),
    )(x, w_eff, b_eff)
    return out[:, :n_classes]


# --------------------------------------------------------------------- main --

if __name__ == "__main__":
    key = jax.random.PRNGKey(0)
    k_x, k_p, k_x2 = jax.random.split(key, 3)

    def reference(x, gamma, beta, fc_weight, fc_bias):
        mean = jnp.mean(x, axis=0, keepdims=True)
        var = jnp.mean((x - mean) ** 2, axis=0, keepdims=True)
        y = gamma * (x - mean) / jnp.sqrt(var + BN_EPS) + beta
        return jnp.matmul(y, fc_weight.T,
                          precision=jax.lax.Precision.HIGHEST) + fc_bias

    # --- small shapes: single-block (no-grid) path ---
    batch, cnn_dim, n_classes = 8, 32, 10
    x = jax.random.normal(k_x, (batch, cnn_dim), jnp.float32)
    gamma, beta, fc_w, fc_b = init_params(k_p, cnn_dim, n_classes)
    params = prepare_params(gamma, beta, fc_w, fc_b)

    out = jax.block_until_ready(lin_classifier_forward(x, params))
    ref = reference(x, gamma, beta, fc_w, fc_b)
    assert out.shape == (batch, n_classes)
    assert jnp.allclose(out, ref, atol=1e-2, rtol=5e-2), "single-block mismatch"

    # --- moderate shapes: still single-block thanks to the VMEM-budget cutoff ---
    batch2, cnn_dim2 = 1024, 256
    x2 = jax.random.normal(k_x2, (batch2, cnn_dim2), jnp.float32)
    g2, bt2, w2, bb2 = init_params(k_p, cnn_dim2, n_classes)
    params2 = prepare_params(g2, bt2, w2, bb2)

    out2 = jax.block_until_ready(lin_classifier_forward(x2, params2))
    ref2 = reference(x2, g2, bt2, w2, bb2)
    assert out2.shape == (batch2, n_classes)
    assert jnp.allclose(out2, ref2, atol=1e-2, rtol=5e-2), "vmem-resident mismatch"

    # --- force the two-pass tiled path: ragged batch (masked stats, no jnp.pad),
    #     2-way split stats reduction, BN folded into the weights ---
    batch3 = 1000
    x3 = x2[:batch3]
    out3 = jax.block_until_ready(
        lin_classifier_forward(x3, params2, tile_n=384, force_tiled=True))
    ref3 = reference(x3, g2, bt2, w2, bb2)
    assert out3.shape == (batch3, n_classes)
    assert jnp.allclose(out3, ref3, atol=1e-2, rtol=5e-2), "tiled mismatch"

    # --- bf16 logits option (halves padded-output HBM writes) ---
    out4 = jax.block_until_ready(
        lin_classifier_forward(x3, params2, tile_n=384, force_tiled=True,
                               out_dtype=jnp.bfloat16))
    assert out4.dtype == jnp.bfloat16
    assert jnp.allclose(out4.astype(jnp.float32), ref3,
                        atol=2e-2, rtol=5e-2), "bf16-logits mismatch"

    print("KERNEL_OK")
</pallas_src>

<mosaic_0001>
module attributes {stable_mosaic.version = 11 : i64} {
  func.func @_bn_fc_single_kernel(%arg0: memref<8x32xf32, #tpu.memory_space<vmem>>, %arg1: memref<1x32xf32, #tpu.memory_space<vmem>>, %arg2: memref<1x32xf32, #tpu.memory_space<vmem>>, %arg3: memref<32x128xbf16, #tpu.memory_space<vmem>>, %arg4: memref<1x128xf32, #tpu.memory_space<vmem>>, %arg5: memref<8x128xf32, #tpu.memory_space<vmem>>) attributes {dimension_semantics = [], scalar_prefetch = 0 : i64, scratch_operands = 0 : i64, tpu.core_type = #tpu.core_type<tc>} {
    %c0 = arith.constant 0 : index
    %c0_0 = arith.constant 0 : index
    %0 = vector.load %arg0[%c0, %c0_0] : memref<8x32xf32, #tpu.memory_space<vmem>>, vector<8x32xf32>
    %cst = arith.constant dense<0.000000e+00> : vector<32xf32>
    %1 = vector.multi_reduction <add>, %0, %cst [0] : vector<8x32xf32> to vector<32xf32>
    %2 = vector.shape_cast %1 : vector<32xf32> to vector<1x32xf32>
    %cst_1 = arith.constant 8.000000e+00 : f32
    %3 = vector.broadcast %cst_1 : f32 to vector<1x32xf32>
    %4 = arith.divf %2, %3 : vector<1x32xf32>
    %5 = vector.broadcast %4 : vector<1x32xf32> to vector<8x32xf32>
    %6 = arith.subf %0, %5 : vector<8x32xf32>
    %7 = arith.mulf %6, %6 : vector<8x32xf32>
    %cst_2 = arith.constant dense<0.000000e+00> : vector<32xf32>
    %8 = vector.multi_reduction <add>, %7, %cst_2 [0] : vector<8x32xf32> to vector<32xf32>
    %9 = vector.shape_cast %8 : vector<32xf32> to vector<1x32xf32>
    %cst_3 = arith.constant 8.000000e+00 : f32
    %10 = vector.broadcast %cst_3 : f32 to vector<1x32xf32>
    %11 = arith.divf %9, %10 : vector<1x32xf32>
    %c0_4 = arith.constant 0 : index
    %c0_5 = arith.constant 0 : index
    %12 = vector.load %arg1[%c0_4, %c0_5] : memref<1x32xf32, #tpu.memory_space<vmem>>, vector<1x32xf32>
    %cst_6 = arith.constant 9.99999974E-6 : f32
    %13 = vector.broadcast %cst_6 : f32 to vector<1x32xf32>
    %14 = arith.addf %11, %13 : vector<1x32xf32>
    %15 = math.rsqrt %14 : vector<1x32xf32>
    %16 = arith.mulf %12, %15 : vector<1x32xf32>
    %17 = vector.broadcast %16 : vector<1x32xf32> to vector<8x32xf32>
    %18 = arith.mulf %6, %17 : vector<8x32xf32>
    %c0_7 = arith.constant 0 : index
    %c0_8 = arith.constant 0 : index
    %19 = vector.load %arg2[%c0_7, %c0_8] : memref<1x32xf32, #tpu.memory_space<vmem>>, vector<1x32xf32>
    %20 = vector.broadcast %19 : vector<1x32xf32> to vector<8x32xf32>
    %21 = arith.addf %18, %20 : vector<8x32xf32>
    %22 = arith.truncf %21 : vector<8x32xf32> to vector<8x32xbf16>
    %c0_9 = arith.constant 0 : index
    %c0_10 = arith.constant 0 : index
    %23 = vector.load %arg3[%c0_9, %c0_10] : memref<32x128xbf16, #tpu.memory_space<vmem>>, vector<32x128xbf16>
    %cst_11 = arith.constant dense<0.000000e+00> : vector<8x128xf32>
    %24 = tpu.matmul %22, %23, %cst_11 {dimension_numbers = #tpu.dot_dimension_numbers<[1], [0], [0], [1], [0, 0, 1, 1], [], []>} : vector<8x32xbf16>, vector<32x128xbf16>, vector<8x128xf32> -> vector<8x128xf32>
    %c0_12 = arith.constant 0 : index
    %c0_13 = arith.constant 0 : index
    %25 = vector.load %arg4[%c0_12, %c0_13] : memref<1x128xf32, #tpu.memory_space<vmem>>, vector<1x128xf32>
    %26 = vector.broadcast %25 : vector<1x128xf32> to vector<8x128xf32>
    %27 = arith.addf %24, %26 : vector<8x128xf32>
    %c0_14 = arith.constant 0 : index
    %c0_15 = arith.constant 0 : index
    %28 = vector.load %arg5[%c0_14, %c0_15] : memref<8x128xf32, #tpu.memory_space<vmem>>, vector<8x128xf32>
    tpu.vector_store %arg5[%c0_14, %c0_15], %27 {strides = array<i32>} : memref<8x128xf32, #tpu.memory_space<vmem>>, vector<8x128xf32>,
    return
  }
}

</mosaic_0001>

<bundles_post_ra>
// kernel: tpu_custom_call.1
= control target key start
LH: loop header
LB: loop body
LE: loop exit
PB: predicated region body
PF: predicated region fallthrough
CT: control target
= control target key end

     0   :  { %10 = vsyncpa [#allocation3], 0  ;;  %s363_s0 = inlined_call_operand.hbm [shape: f32[8,32], index: 0, kind: input, shape index: {}]   ;;  %s364_s1 = inlined_call_operand.vmem [shape: f32[1,32], index: 1, kind: input, shape index: {}]   ;;  %s365_s2 = inlined_call_operand.vmem [shape: f32[1,32], index: 2, kind: input, shape index: {}]   ;;  %s366_s3 = inlined_call_operand.hbm [shape: bf16[32,128], index: 3, kind: input, shape index: {}]   ;;  %s367_s4 = inlined_call_operand.vmem [shape: f32[1,128], index: 4, kind: input, shape index: {}]   ;;  %s368_s5 = inlined_call_operand.hbm [shape: f32[8,128], index: 5, kind: output, shape index: {}]  }
   0x1   :  { %11 = vsyncpa [#allocation6], 0 }
   0x2   :  { %12 = vsyncpa [#allocation4], 0  ;;  %s271_s18 = smov [#allocation2]   ;;  %s272_s20 = smov [#allocation5]  }
   0x3   :  { %s19_s19 = sshll.u32 %s271_s18, 4  ;;  %s32_s21 = sshll.u32 %s272_s20, 4  ;;  %s20_s19 = int_to_ptr.vmem [resolvable:$true] %s19_s19  ;;  %s308_s21 = int_to_ptr.vmem [resolvable:$true] %s32_s21 }
   0x4   :  { %s199_s24 = scalar_lea.hbm %s363_s0, 128 }
   0x5   :  { %p200_p0 = scmp.ne.s32.totalorder %s363_s0, %s199_s24  ;;  %p203_p1 = scmp.lt.u32.totalorder %s199_s24, %s363_s0 }
   0x7   :  { %p205_p2 = pnand %p203_p1, %p200_p0 }
   0x9   :  { %208 = shalt.err (!%p205_p2)
}
   0xa   :  { %s209_s29 = scalar_lea.vmem %s20_s19, 128  ;;  %p214_p4 = scmp.lt.s32.totalorder %s20_s19, %s20_s19 }
   0xb   :  { %p210_p3 = scmp.ne.s32.totalorder %s20_s19, %s209_s29  ;;  %p215_p5 = scmp.lt.s32.totalorder %s209_s29, %s209_s29 }
   0xd   :  { %p216_p6 = por %p215_p5, %p214_p4 }
   0xf   :  { %p217_p7 = pnand %p216_p6, %p210_p3 }
  0x11   :  { %220 = shalt.err (!%p217_p7)
}
  0x12   :  { %22 = dma.hbm_to_vmem [thread:$0]  %s363_s0, 128, %s20_s19, [#allocation3]  }
  0x13   :  { %s221_s9 = scalar_lea.hbm %s366_s3, 256 }
  0x14   :  { %p222_p8 = scmp.ne.s32.totalorder %s366_s3, %s221_s9  ;;  %p225_p9 = scmp.lt.u32.totalorder %s221_s9, %s366_s3 }
  0x16   :  { %p227_p10 = pnand %p225_p9, %p222_p8 }
  0x18   :  { %230 = shalt.err (!%p227_p10)
}
  0x19   :  { %s231_s14 = scalar_lea.vmem %s308_s21, 256  ;;  %p236_p12 = scmp.lt.s32.totalorder %s308_s21, %s308_s21 }
  0x1a   :  { %p232_p11 = scmp.ne.s32.totalorder %s308_s21, %s231_s14  ;;  %p237_p13 = scmp.lt.s32.totalorder %s231_s14, %s231_s14 }
  0x1c   :  { %p238_p0 = por %p237_p13, %p236_p12 }
  0x1e   :  { %p239_p1 = pnand %p238_p0, %p232_p11 }
  0x20   :  { %242 = shalt.err (!%p239_p1)
}
  0x21   :  { %s273_s0 = smov 64   ;;  %s274_s15 = smov 4  }
  0x22   :  { %38 = dma.hbm_to_vmem [thread:$0]  %s366_s3, 256, %s308_s21, [#allocation6], %s273_s0, %s273_s0, %s274_s15  }
  0x23   :  { %265 = dma.done.wait [#allocation3], 128  }
  0x24   :  { %266 = vsyncadd [#allocation3], 4294967168 }
  0x25   :  { %267 = dma.done.wait [#allocation6], 256  }
  0x26   :  { %268 = vsyncadd [#allocation6], 4294967040  ;;  %v275_v0 = vmov 0.0   ;;  %vm276_vm0 = vmmov 0   ;;  %v195_v1 = vld [vmem:[#allocation5] sm:$0xff]   ;;  %vm49_vm1 = vcmask 261120   ;;  %v74_v23 = vlaneseq }
  0x27   :  { %180 = vmatprep.subr.bf16.mxu0 %v275_v0  ;;  %184 = vmatprep.mubr.msk.bf16.mxu0 %vm276_vm0, %v275_v0  ;;  %v196_v2 = vld [vmem:[#allocation5 + $0x8] sm:$0xff]   ;;  %v48_v3 = vld [vmem:[#allocation2] sm:$0xff]  ;;  %s277_s23 = smov [#allocation7]  }
  0x28   :  { %181 = vmatpush3.bf16.msra.mxu0 %v195_v1  ;;  %v50_v4 = vsel %vm49_vm1, %v48_v3, 0.0  ;;  %v75_v24 = vshrl.u32 %v74_v23, 7  ;;  %v69_v25 = vld [vmem:[%s364_s1] sm:$0x1]  ;;  %s162_s24 = sshll.u32 %s277_s23, 4  ;;  %s163_s24 = int_to_ptr.vmem [resolvable:$true] %s162_s24 }
  0x29   :  { %182 = vmatprep.subr.bf16.mxu0 %v275_v0  ;;  %v51_v5 = vrot.slane %v50_v4, 4  ;;  %v172_v30 = vld [vmem:[%s365_s2] ss:$0 sm:$0xff]  ;;  %s243_s1 = scalar_lea.vmem %s163_s24, 128  ;;  %p248_p3 = scmp.lt.s32.totalorder %s163_s24, %s163_s24 }
  0x2a   :  { %v76_v26 = vsub.s32 0, %v75_v24  ;;  %v173_v34 = vld [vmem:[%s367_s4] ss:$0 sm:$0xff]  ;;  %p244_p2 = scmp.ne.s32.totalorder %s163_s24, %s243_s1  ;;  %p249_p4 = scmp.lt.s32.totalorder %s243_s1, %s243_s1 }
  0x2b   :  { %v52_v6 = vadd.f32 %v51_v5, %v50_v4 }
  0x2c   :  { %183 = vmatpush3.bf16.msra.mxu0 %v196_v2  ;;  %p250_p5 = por %p249_p4, %p248_p3 }
  0x2d   :  { %v53_v7 = vrot.slane %v52_v6, 2 }
  0x2e   :  { %p251_p6 = pnand %p250_p5, %p244_p2 }
  0x2f   :  { %v54_v8 = vadd.f32 %v53_v7, %v52_v6 }
  0x31   :  { %v55_v9 = vrot.slane %v54_v8, 1 }
  0x33   :  { %v56_v10 = vadd.f32 %v55_v9, %v54_v8 }
  0x35   :  { %v58_v11 = vmul.f32 0.125, %v56_v10 }
  0x37   :  { %v59_v12 = vsub.f32 %v48_v3, %v58_v11 }
  0x39   :  { %v60_v13 = vmul.f32 %v59_v12, %v59_v12 }
  0x3b   :  { %v61_v14 = vsel %vm49_vm1, %v60_v13, 0.0 }
  0x3c   :  { %v62_v15 = vrot.slane %v61_v14, 4 }
  0x3e   :  { %v63_v16 = vadd.f32 %v62_v15, %v61_v14 }
  0x40   :  { %v64_v17 = vrot.slane %v63_v16, 2 }
  0x42   :  { %v65_v18 = vadd.f32 %v64_v17, %v63_v16 }
  0x44   :  { %v66_v19 = vrot.slane %v65_v18, 1 }
  0x46   :  { %v67_v20 = vadd.f32 %v66_v19, %v65_v18 }
  0x48   :  { %v68_v21 = vmul.f32 0.125, %v67_v20 }
  0x4a   :  { %v70_v22 = vadd.f32 1e-05, %v68_v21 }
  0x4c   :  { %197 = vrsqrt.f32 %v70_v22 }
  0x56   :  { %v198_v27 = vpop.eup %197 }
  0x57   :  { %v72_v28 = vmul.f32 %v198_v27, %v69_v25 }
  0x59   :  { %v77_v29 = vrot.slane %v72_v28, %v76_v26 }
  0x5b   :  { %v79_v31 = vmul.f32 %v77_v29, %v59_v12 }
  0x5d   :  { %v87_v32 = vadd.f32 %v172_v30, %v79_v31 }
  0x5f   :  { %v88_v33 = vpack.c.bf16 %v87_v32, %v87_v32 }
  0x61   :  { %185 = vmatmul.mubr.msk.bf16.vlgmr.msra.gmra.mrb[0].mxu0 %vm49_vm1, %v88_v33 }
 0x134   :  { %v149_v35 = vpop.f32.mrb[0].mxu0 }
 0x135   :  { %v150_v36 = vadd.f32 %v173_v34, %v149_v35  ;;  %v186_v37 = vpop.f32.mrb[1].mxu0 }
 0x136   :  { %v152_v38 = vpop.f32.mrb[2].mxu0 }
 0x137   :  { %155 = vst [vmem:[#allocation7] sm:$0xff] %v150_v36  ;;  %v187_v39 = vpop.f32.mrb[3].mxu0 }
 0x138   :  { %254 = shalt.err (!%p251_p6)
}
 0x139   :  { %s255_s4 = scalar_lea.hbm %s368_s5, 128 }
 0x13a   :  { %p256_p7 = scmp.ne.s32.totalorder %s368_s5, %s255_s4  ;;  %p259_p8 = scmp.lt.u32.totalorder %s255_s4, %s368_s5 }
 0x13c   :  { %p261_p9 = pnand %p259_p8, %p256_p7 }
 0x13e   :  { %264 = shalt.err (!%p261_p9)
}
 0x13f   :  { %165 = dma.vmem_to_hbm [thread:$0]  %s163_s24, 128, %s368_s5, [#allocation4]  }
 0x140   :  { %269 = dma.done.wait [#allocation4], 128  }
 0x141   :  { %270 = vsyncadd [#allocation4], 4294967168 }
 0x142   :  { %169 = vsyncpa [#allocation3], 1 }
 0x143   :  { %170 = vsyncpa [#allocation6], 1 }
 0x144   :  { %171 = vsyncpa [#allocation4], 1 }

</bundles_post_ra>
